<compile_context>
chip_gen: v5e
topology: v5e:2x2
jax: 0.10.0
libtpu: 0.0.40
codegen_flags: <defaults>
</compile_context>

<pallas_src>
import numpy as np
import jax
import jax.numpy as jnp
from jax.experimental import pallas as pl
from jax.experimental.pallas import tpu as pltpu


def _round_up(x, m):
    return ((x + m - 1) // m) * m


def _vmem_capacity_bytes():
    try:
        return int(pltpu.get_tpu_info().vmem_capacity_bytes)
    except Exception:
        return 64 * 1024 * 1024  # conservative (v7x per-TC VMEM)


def _vlm_kernel(scale_ref, x_ref, wf_ref, zw_ref, logits_ref, feat_ref, acc_ref):
    """One (B-tile, F-tile) grid step.

    scale_ref : SMEM (1,)        f32   log logit-scale
    x_ref     : VMEM (tm, tk)    bf16  flattened-image tile
    wf_ref    : VMEM (tk, Dp)    bf16  featurizer projection tile
    zw_ref    : VMEM (Dp, Kp)    bf16  zero-shot class weights (VMEM-resident)
    logits_ref: VMEM (tm, Kp)    f32   output logits tile
    feat_ref  : VMEM (tm, Dp)    f32   output normalized-features tile
    acc_ref   : VMEM (tm, Dp)    f32   feature accumulator scratch
    """
    k = pl.program_id(1)

    @pl.when(k == 0)
    def _init():
        acc_ref[...] = jnp.zeros_like(acc_ref)

    # Dominant GEMM: accumulate the featurizer projection over the F axis.
    acc_ref[...] += jnp.dot(x_ref[...], wf_ref[...],
                            preferred_element_type=jnp.float32)

    # Finalize only on the last F step: L2 norm, feature write-out, tiny
    # classifier GEMM and logit-scale multiply (exp/rsqrt hit the idle EUP).
    @pl.when(k == pl.num_programs(1) - 1)
    def _finalize():
        feats = acc_ref[...]
        inv_norm = jax.lax.rsqrt(
            jnp.sum(feats * feats, axis=-1, keepdims=True) + 1e-12)
        feats = feats * inv_norm
        feat_ref[...] = feats
        scale = jnp.exp(scale_ref[0])
        logits_ref[...] = scale * jnp.dot(
            feats.astype(zw_ref.dtype), zw_ref[...],
            preferred_element_type=jnp.float32)


def zero_shot_vlm_forward(x_nchw, w_feat, zs_weights, logit_scale,
                          return_features=False, tk=None):
    """x_nchw: [B, C, H, W]; w_feat: [F, D]; zs_weights: [D, K]; returns logits
    [B, K] (and features [B, D] if return_features)."""
    B, C, H, W = x_nchw.shape
    F = C * H * W
    D = w_feat.shape[1]
    K = zs_weights.shape[1]

    # ---- tile sizes / padding (lane-dense outputs, (8,128)-aligned blocks) --
    tm = 128 if B >= 128 else _round_up(B, 8)
    B_pad = _round_up(B, tm)
    D_pad = _round_up(D, 128)
    K_pad = _round_up(K, 128)

    vmem_cap = _vmem_capacity_bytes()
    vmem_limit = int(max(32 * 1024 * 1024,
                         min(0.9 * vmem_cap, 100 * 1024 * 1024)))
    budget = int(min(0.45 * vmem_cap, 80 * 1024 * 1024))

    if tk is None:
        fixed = (D_pad * K_pad * 2          # resident zero-shot weights (bf16)
                 + tm * D_pad * 4           # accumulator scratch
                 + 2 * tm * K_pad * 4       # logits out (double-buffered)
                 + 2 * tm * D_pad * 4)      # feats out  (double-buffered)
        per_tk = 4 * (tm + D_pad)           # 2 bufs x (x tile + wf tile), bf16
        tk = (max(budget - fixed, 128 * per_tk) // per_tk) // 128 * 128
        tk = int(np.clip(tk, 128, 4096))
    tk = int(min(tk, _round_up(F, 128)))
    F_pad = _round_up(F, tk)

    # ---- pad & cast (zero padding is exact for the matmuls and the L2 norm) -
    x_flat = x_nchw.reshape(B, F)
    x_p = jnp.pad(x_flat, ((0, B_pad - B), (0, F_pad - F))).astype(jnp.bfloat16)
    wf_p = jnp.pad(w_feat, ((0, F_pad - F), (0, D_pad - D))).astype(jnp.bfloat16)
    zs_p = jnp.pad(zs_weights, ((0, D_pad - D), (0, K_pad - K))).astype(jnp.bfloat16)
    scale = jnp.asarray(logit_scale, jnp.float32).reshape(1)

    grid = (B_pad // tm, F_pad // tk)

    cost = pl.CostEstimate(
        flops=int(2 * B_pad * F_pad * D_pad + 2 * B_pad * D_pad * K_pad),
        transcendentals=int(B_pad + 1),
        bytes_accessed=int(x_p.size * 2 + wf_p.size * 2 + zs_p.size * 2
                           + B_pad * K_pad * 4 + B_pad * D_pad * 4))

    logits_p, feats_p = pl.pallas_call(
        _vlm_kernel,
        grid=grid,
        in_specs=[
            pl.BlockSpec(memory_space=pltpu.SMEM),                 # logit scale
            pl.BlockSpec((tm, tk), lambda i, k: (i, k)),           # x tile
            pl.BlockSpec((tk, D_pad), lambda i, k: (k, 0)),        # w_feat tile
            pl.BlockSpec((D_pad, K_pad), lambda i, k: (0, 0)),     # zs weights
        ],
        out_specs=[
            pl.BlockSpec((tm, K_pad), lambda i, k: (i, 0)),        # logits
            pl.BlockSpec((tm, D_pad), lambda i, k: (i, 0)),        # features
        ],
        out_shape=(
            jax.ShapeDtypeStruct((B_pad, K_pad), jnp.float32),
            jax.ShapeDtypeStruct((B_pad, D_pad), jnp.float32),
        ),
        scratch_shapes=[pltpu.VMEM((tm, D_pad), jnp.float32)],
        compiler_params=pltpu.CompilerParams(
            dimension_semantics=("parallel", "arbitrary"),
            vmem_limit_bytes=vmem_limit),
        cost_estimate=cost,
    )(scale, x_p, wf_p, zs_p)

    logits = logits_p[:B, :K]
    feats = feats_p[:B, :D]
    if return_features:
        return logits, feats
    return logits


def build_zeroshot_weights(key, num_classes, num_templates, embed_dim):
    """Synthetic deterministic stand-in for zeroshot_classifier():
    per-(template, class) text embeddings -> L2 norm -> average over templates
    -> L2 norm.  Returns [embed_dim, num_classes]."""
    emb = jax.random.normal(key, (num_templates, num_classes, embed_dim),
                            dtype=jnp.float32)
    emb = emb / jnp.linalg.norm(emb, axis=-1, keepdims=True)
    cls = emb.mean(axis=0)
    cls = cls / jnp.linalg.norm(cls, axis=-1, keepdims=True)
    return cls.T  # [D, K]


if __name__ == "__main__":
    B, C, H, W = 2, 4, 16, 16          # input images, NCHW
    D = 32                              # embedding dim
    K = 8                               # number of classnames
    T = 4                               # number of prompt templates
    F = C * H * W

    key = jax.random.PRNGKey(0)
    k_x, k_wf, k_zs = jax.random.split(key, 3)

    x = jax.random.normal(k_x, (B, C, H, W), dtype=jnp.float32)
    # TODO(synk): featurizer()/zeroshot_classifier() are abstract (raise
    # NotImplementedError) in the PyTorch module; synthetic linear image-tower
    # weights and deterministic text embeddings stand in for the VLM backbone.
    w_feat = jax.random.normal(k_wf, (F, D), dtype=jnp.float32) / np.sqrt(F)
    zs_weights = build_zeroshot_weights(k_zs, K, T, D)
    logit_scale = jnp.asarray(np.log(1.0 / 0.07), jnp.float32)  # nn.Parameter init

    # Pure-JAX f32 reference.
    x_flat = x.reshape(B, F)
    feats_ref = x_flat @ w_feat
    feats_ref = feats_ref / jnp.sqrt(
        jnp.sum(feats_ref * feats_ref, axis=-1, keepdims=True) + 1e-12)
    logits_ref = jnp.exp(logit_scale) * (feats_ref @ zs_weights)

    # tk=256 exercises the multi-step F reduction; tk=None exercises the
    # VMEM-budget-based auto tile selection.
    for tk_choice in (256, None):
        logits, feats = zero_shot_vlm_forward(
            x, w_feat, zs_weights, logit_scale,
            return_features=True, tk=tk_choice)
        jax.block_until_ready((logits, feats))
        assert logits.shape == (B, K) and feats.shape == (B, D)
        # bf16 MXU operands with f32 accumulation -> loosened tolerances.
        np.testing.assert_allclose(np.asarray(feats), np.asarray(feats_ref),
                                   rtol=5e-2, atol=2e-2)
        np.testing.assert_allclose(np.asarray(logits), np.asarray(logits_ref),
                                   rtol=1e-1, atol=1e-1)

    print("KERNEL_OK")
</pallas_src>

<mosaic_0001>
module attributes {stable_mosaic.version = 11 : i64} {
  func.func @_vlm_kernel(%arg0: i32, %arg1: i32, %arg2: memref<1xf32, #tpu.memory_space<smem>>, %arg3: memref<8x256xbf16, #tpu.memory_space<vmem>>, %arg4: memref<256x128xbf16, #tpu.memory_space<vmem>>, %arg5: memref<128x128xbf16, #tpu.memory_space<vmem>>, %arg6: memref<8x128xf32, #tpu.memory_space<vmem>>, %arg7: memref<8x128xf32, #tpu.memory_space<vmem>>, %arg8: memref<8x128xf32, #tpu.memory_space<vmem>>) attributes {dimension_semantics = [#tpu.dimension_semantics<parallel>, #tpu.dimension_semantics<arbitrary>], iteration_bounds = array<i64: 1, 4>, scalar_prefetch = 0 : i64, scratch_operands = 1 : i64, tpu.core_type = #tpu.core_type<tc>, window_params = [{transform_indices = @transform_0, window_bounds = array<i64: 1>}, {transform_indices = @transform_1, window_bounds = array<i64: 8, 256>}, {transform_indices = @transform_2, window_bounds = array<i64: 256, 128>}, {pipeline_mode = #tpu.pipeline_mode<synchronous>, transform_indices = @transform_3, window_bounds = array<i64: 128, 128>}, {transform_indices = @transform_4, window_bounds = array<i64: 8, 128>}, {transform_indices = @transform_5, window_bounds = array<i64: 8, 128>}]} {
    %c0_i32 = arith.constant 0 : i32
    %0 = arith.cmpi eq, %arg1, %c0_i32 : i32
    %1 = arith.extui %0 : i1 to i32
    %c0_i32_0 = arith.constant 0 : i32
    %2 = arith.cmpi ne, %1, %c0_i32_0 : i32
    scf.if %2 {
      %cst_9 = arith.constant 0.000000e+00 : f32
      %12 = vector.broadcast %cst_9 : f32 to vector<8x128xf32>
      %c0_10 = arith.constant 0 : index
      %c0_11 = arith.constant 0 : index
      %13 = vector.load %arg8[%c0_10, %c0_11] : memref<8x128xf32, #tpu.memory_space<vmem>>, vector<8x128xf32>
      tpu.vector_store %arg8[%c0_10, %c0_11], %12 {strides = array<i32>} : memref<8x128xf32, #tpu.memory_space<vmem>>, vector<8x128xf32>,
    } else {
    }
    %c0 = arith.constant 0 : index
    %c0_1 = arith.constant 0 : index
    %3 = vector.load %arg8[%c0, %c0_1] : memref<8x128xf32, #tpu.memory_space<vmem>>, vector<8x128xf32>
    %c0_2 = arith.constant 0 : index
    %c0_3 = arith.constant 0 : index
    %4 = vector.load %arg3[%c0_2, %c0_3] : memref<8x256xbf16, #tpu.memory_space<vmem>>, vector<8x256xbf16>
    %c0_4 = arith.constant 0 : index
    %c0_5 = arith.constant 0 : index
    %5 = vector.load %arg4[%c0_4, %c0_5] : memref<256x128xbf16, #tpu.memory_space<vmem>>, vector<256x128xbf16>
    %cst = arith.constant dense<0.000000e+00> : vector<8x128xf32>
    %6 = tpu.matmul %4, %5, %cst {dimension_numbers = #tpu.dot_dimension_numbers<[1], [0], [0], [1], [0, 0, 1, 1], [], []>} : vector<8x256xbf16>, vector<256x128xbf16>, vector<8x128xf32> -> vector<8x128xf32>
    %7 = arith.addf %3, %6 : vector<8x128xf32>
    %c0_6 = arith.constant 0 : index
    %c0_7 = arith.constant 0 : index
    %8 = vector.load %arg8[%c0_6, %c0_7] : memref<8x128xf32, #tpu.memory_space<vmem>>, vector<8x128xf32>
    tpu.vector_store %arg8[%c0_6, %c0_7], %7 {strides = array<i32>} : memref<8x128xf32, #tpu.memory_space<vmem>>, vector<8x128xf32>,
    %c3_i32 = arith.constant 3 : i32
    %9 = arith.cmpi eq, %arg1, %c3_i32 : i32
    %10 = arith.extui %9 : i1 to i32
    %c0_i32_8 = arith.constant 0 : i32
    %11 = arith.cmpi ne, %10, %c0_i32_8 : i32
    scf.if %11 {
      %c0_9 = arith.constant 0 : index
      %c0_10 = arith.constant 0 : index
      %12 = vector.load %arg8[%c0_9, %c0_10] : memref<8x128xf32, #tpu.memory_space<vmem>>, vector<8x128xf32>
      %13 = arith.mulf %12, %12 : vector<8x128xf32>
      %cst_11 = arith.constant dense<0.000000e+00> : vector<8xf32>
      %14 = vector.multi_reduction <add>, %13, %cst_11 [1] : vector<8x128xf32> to vector<8xf32>
      %15 = vector.shape_cast %14 : vector<8xf32> to vector<8x1xf32>
      %cst_12 = arith.constant 9.99999996E-13 : f32
      %16 = vector.broadcast %cst_12 : f32 to vector<8x1xf32>
      %17 = arith.addf %15, %16 : vector<8x1xf32>
      %18 = math.rsqrt %17 : vector<8x1xf32>
      %19 = vector.broadcast %18 : vector<8x1xf32> to vector<8x128xf32>
      %20 = arith.mulf %12, %19 : vector<8x128xf32>
      %c0_13 = arith.constant 0 : index
      %c0_14 = arith.constant 0 : index
      %21 = vector.load %arg7[%c0_13, %c0_14] : memref<8x128xf32, #tpu.memory_space<vmem>>, vector<8x128xf32>
      tpu.vector_store %arg7[%c0_13, %c0_14], %20 {strides = array<i32>} : memref<8x128xf32, #tpu.memory_space<vmem>>, vector<8x128xf32>,
      %c0_15 = arith.constant 0 : index
      %22 = memref.load %arg2[%c0_15] : memref<1xf32, #tpu.memory_space<smem>>
      %23 = math.exp %22 : f32
      %24 = arith.truncf %20 : vector<8x128xf32> to vector<8x128xbf16>
      %c0_16 = arith.constant 0 : index
      %c0_17 = arith.constant 0 : index
      %25 = vector.load %arg5[%c0_16, %c0_17] : memref<128x128xbf16, #tpu.memory_space<vmem>>, vector<128x128xbf16>
      %cst_18 = arith.constant dense<0.000000e+00> : vector<8x128xf32>
      %26 = tpu.matmul %24, %25, %cst_18 {dimension_numbers = #tpu.dot_dimension_numbers<[1], [0], [0], [1], [0, 0, 1, 1], [], []>} : vector<8x128xbf16>, vector<128x128xbf16>, vector<8x128xf32> -> vector<8x128xf32>
      %27 = vector.broadcast %23 : f32 to vector<8x128xf32>
      %28 = arith.mulf %27, %26 : vector<8x128xf32>
      %c0_19 = arith.constant 0 : index
      %c0_20 = arith.constant 0 : index
      %29 = vector.load %arg6[%c0_19, %c0_20] : memref<8x128xf32, #tpu.memory_space<vmem>>, vector<8x128xf32>
      tpu.vector_store %arg6[%c0_19, %c0_20], %28 {strides = array<i32>} : memref<8x128xf32, #tpu.memory_space<vmem>>, vector<8x128xf32>,
    } else {
    }
    return
  }
  func.func @transform_0(%arg0: i32, %arg1: i32) -> i32 {
    %c0_i32 = arith.constant 0 : i32
    %c0_i32_0 = arith.constant 0 : i32
    return %c0_i32 : i32
  }
  func.func @transform_1(%arg0: i32, %arg1: i32) -> (i32, i32) {
    %c0_i32 = arith.constant 0 : i32
    return %arg0, %arg1 : i32, i32
  }
  func.func @transform_2(%arg0: i32, %arg1: i32) -> (i32, i32) {
    %c0_i32 = arith.constant 0 : i32
    %c0_i32_0 = arith.constant 0 : i32
    return %arg1, %c0_i32 : i32, i32
  }
  func.func @transform_3(%arg0: i32, %arg1: i32) -> (i32, i32) {
    %c0_i32 = arith.constant 0 : i32
    %c0_i32_0 = arith.constant 0 : i32
    %c0_i32_1 = arith.constant 0 : i32
    return %c0_i32, %c0_i32_0 : i32, i32
  }
  func.func @transform_4(%arg0: i32, %arg1: i32) -> (i32, i32) {
    %c0_i32 = arith.constant 0 : i32
    %c0_i32_0 = arith.constant 0 : i32
    return %arg0, %c0_i32 : i32, i32
  }
  func.func @transform_5(%arg0: i32, %arg1: i32) -> (i32, i32) {
    %c0_i32 = arith.constant 0 : i32
    %c0_i32_0 = arith.constant 0 : i32
    return %arg0, %c0_i32 : i32, i32
  }
}

</mosaic_0001>

<bundles_post_ra>
// kernel: tpu_custom_call.1
= control target key start
LH: loop header
LB: loop body
LE: loop exit
PB: predicated region body
PF: predicated region fallthrough
CT: control target
= control target key end

     0   :  { %s1388_s0 = inlined_call_operand.<no memory space> [shape: f32[1], index: 0, kind: input, shape index: {}]   ;;  %s1389_s1 = inlined_call_operand.hbm [shape: bf16[8,1024], index: 1, kind: input, shape index: {}]   ;;  %s1390_s2 = inlined_call_operand.hbm [shape: bf16[1024,128], index: 2, kind: input, shape index: {}]   ;;  %s1391_s3 = inlined_call_operand.hbm [shape: bf16[128,128], index: 3, kind: input, shape index: {}]   ;;  %s1392_s4 = inlined_call_operand.hbm [shape: f32[8,128], index: 4, kind: output, shape index: {0}]   ;;  %s1393_s5 = inlined_call_operand.hbm [shape: f32[8,128], index: 5, kind: output, shape index: {1}]  }
   0x1   :  { %1397 = sst [smem:[#allocation19_spill]] %s1391_s3 }
   0x2   :  { %11 = sst [smem:[#allocation3]] %s1388_s0 }
   0x3   :  { %12 = vsyncpa [#allocation5], 0 }
   0x4   :  { %14 = vsyncpa [#allocation5 + $0x1], 0 }
   0x5   :  { %15 = vsyncpa [#allocation8], 0 }
   0x6   :  { %17 = vsyncpa [#allocation8 + $0x1], 0 }
   0x7   :  { %18 = vsyncpa [#allocation6], 0 }
   0x8   :  { %19 = vsyncpa [#allocation12], 0  ;;  %s1220_s20 = smov 0   ;;  %s1222_s21 = smov 0  }
   0x9   :  { %s1224_s22 = smov 0   ;;  %s1226_s23 = smov 0  }
   0xa   :  { %s1228_s24 = smov 0   ;;  %s1230_s25 = smov 0  }
   0xb LB: > { %s1251_s0 = sadd.s32 4294967295, %s1179_s25   ;;  %p730_p0 = scmp.ge.s32.totalorder %s1179_s25, 1  ;;  %s1179_s25 = sphi %s1230_s25, %s25_s25   ;;  %s1175_s24 = sphi %s1228_s24, %s1410_s24   ;;  %s1171_s23 = sphi %s1226_s23, %s1409_s23   ;;  %s1167_s22 = sphi %s1224_s22, %s1408_s22   ;;  %s1163_s21 = sphi %s1222_s21, %s1407_s21   ;;  %s1159_s20 = sphi %s1220_s20, %s1406_s20  }
   0xc   : > { %p81_p1 = scmp.eq.s32.totalorder %s1251_s0, 0  ;;  %p190_p2 = scmp.lt.s32.totalorder %s1179_s25, 5 }
   0xd   : > { %s1398_s3 = sld [smem:[#allocation19_spill]]  ;;  %s1181_s30 = smov [#allocation9]  }
   0xe   : > { %p1259_p3 = pnand %p730_p0, %p190_p2  ;;  %s206_s6 = sshll.u32 %s1181_s30, 4  ;;  %s207_s6 = int_to_ptr.vmem [resolvable:$true] %s206_s6 }
   0xf   : > { %s1394_s7 = smov 64   ;;  %s1395_s8 = smov 4  }
  0x10   : > { %p891_p4 = pneg %p1259_p3  ;;  %s34_s9 = sadd.s32 1, %s1175_s24 }
  0x11   : > { %p35_p6 = scmp.ge.s32.totalorder %s34_s9, 4  ;;  %s67_s10 = sadd.s32 1, %s1167_s22 }
  0x12   : > { %p892_p5 = pnand %p891_p4, %p81_p1  ;;  %p74_p7 = scmp.ne.s32.totalorder %s1167_s22, %s1163_s21 }
  0x13   : > { %s204_s28 = sshll.u32 %s1398_s3, 4  ;;  %p75_p8 = scmp.eq.s32.totalorder %s1179_s25, 0  ;;  %s205_s28 = int_to_ptr.hbm [resolvable:$true] %s204_s28 }
  0x14   : > { %894 = dma.hbm_to_vmem [thread:$0]  (!%p892_p5), %s205_s28, 1024, %s207_s6, [#allocation8], %s1394_s7, %s1394_s7, %s1395_s8  }
  0x15   : > { %s1412_s9 = smov (%p35_p6, %s34_s9), 0  ;;  %p1277_p9 = por %p75_p8, %p74_p7 }
  0x16   : > { %1400 = sst [smem:[#allocation18_spill]] %s1412_s9  ;;  %p80_p10 = scmp.ne.s32.totalorder %s1163_s21, %s1159_s20 }
  0x17   : > { %s63_s12 = ssub.s32 %s1175_s24, %s1412_s9  ;;  %p903_p11 = scmp.lt.s32.totalorder %s1179_s25, 4 }
  0x18   : > { %p65_p12 = scmp.eq.s32.totalorder %s63_s12, 0  ;;  %p1288_p13 = por %p81_p1, %p80_p10 }
  0x19   : > { %s220_s14 = sand.u32 1, %s1167_s22   ;;  %s847_s15 = sshll.u32 %s1175_s24, 3 }
  0x1a   : > { %s1295_s16 = scalar_select %p65_p12, %s1167_s22, %s67_s10  }
  0x1b   : > { %s733_s17 = sshll.u32 %s220_s14, 3  ;;  %s231_s26 = scalar_lea.hbm %s1389_s1, %s847_s15 }
  0x1c   : > { %s233_s20 = sshll.u32 %s231_s26, 4  ;;  %s224_s27 = scalar_lea.vmem [#allocation4], %s733_s17  ;;  %s234_s20 = int_to_ptr.hbm [resolvable:$true] %s233_s20 }
  0x1d   : > { %s235_s28 = sshll.u32 %s224_s27, 4  ;;  %p896_p0 = pnand %p903_p11, %p1277_p9  ;;  %s236_s28 = int_to_ptr.vmem [resolvable:$true] %s235_s28 }
  0x1e   : > { %s736_s30 = sshll.u32 %s220_s14, 7  ;;  %s848_s6 = sshll.u32 %s1175_s24, 7 }
  0x1f   : > { %s246_s12 = scalar_lea.vmem [#allocation7], %s736_s30  ;;  %s221_s10 = scalar_lea.sflag [#allocation5], %s220_s14 }
  0x20   : > { %s254_s7 = sshll.u32 %s246_s12, 4  ;;  %s242_s8 = sand.u32 1, %s1179_s25   ;;  %s255_s7 = int_to_ptr.vmem [resolvable:$true] %s254_s7 }
  0x21   : > { %898 = dma.hbm_to_vmem [thread:$0]  (!%p896_p0), %s234_s20, 128, %s236_s28, %s221_s10  }
  0x22   : > { %s251_s15 = scalar_lea.hbm %s1390_s2, %s848_s6  ;;  %s243_s17 = scalar_lea.sflag [#allocation8], %s242_s8 }
  0x23   : > { %s252_s18 = sshll.u32 %s251_s15, 4  ;;  %s1403_s19 = smov 4   ;;  %s253_s18 = int_to_ptr.hbm [resolvable:$true] %s252_s18 }
  0x24   : > { %s1404_s26 = smov 64   ;;  %266 = sbr.rel (%p1259_p3) target bundleno = 513 (0x201), region = 36 }
  0x25   : > { %901 = dma.hbm_to_vmem [thread:$0]  (!%p896_p0), %s253_s18, 2048, %s255_s7, %s243_s17, %s1404_s26, %s1404_s26, %s1403_s19  }
  0x26   : > { %s268_s11 = sand.u32 (!%p1259_p3), 1, %s1163_s21  }
  0x27   : > { %s740_s14 = sshll.u32 (!%p1259_p3), %s268_s11, 3  ;;  %s269_s20 = scalar_lea.sflag (!%p1259_p3), [#allocation5], %s268_s11 }
  0x28   : > { %s1315_s27 = scalar_lea.vmem (!%p1259_p3), [#allocation4], %s740_s14 }
  0x29   : > { %1138 = dma.done.wait (%p1288_p13), %s269_s20, 128  }
  0x2a   : > { %1140 = vsyncadd (%p1288_p13), %s269_s20, 4294967168  ;;  %s278_s3 = sand.u32 1, %s1251_s0   ;;  %s741_s8 = sshll.u32 %s268_s11, 7 }
  0x2b   : > { %s279_s7 = scalar_lea.sflag [#allocation8], %s278_s3  ;;  %s1322_s9 = scalar_lea.vmem [#allocation7], %s741_s8 }
  0x2c   : > { %1142 = dma.done.wait (%p1288_p13), %s279_s7, 2048  }
  0x2d   : > { %1144 = vsyncadd (%p1288_p13), %s279_s7, 4294965248 }
  0x2e   : > { %1146 = dma.done.wait (%p81_p1), [#allocation8], 1024  }
  0x2f   : > { %1148 = vsyncadd (%p81_p1), [#allocation8], 4294966272  ;;  %p743_p2 = scmp.ne.s32.totalorder %s1171_s23, 0 }
  0x31   : > { %320 = sbr.rel (%p743_p2) target bundleno = 56 (0x38), region = 52 }
  0x36   : > { %v1184_v0 = vmov 0.0  }
  0x37   : > { %321 = vst [vmem:[#allocation2] sm:$0xff] %v1184_v0 }
  0x38 PF: > { %v856_v1 = vld [vmem:[%s1322_s9 + $0x38] sm:$0xff]  ;;  %v855_v3 = vld [vmem:[%s1322_s9 + $0x30] sm:$0xff]  ;;  %v854_v5 = vld [vmem:[%s1322_s9 + $0x28] sm:$0xff]  ;;  %p808_p1 = scmp.ne.s32.totalorder %s1171_s23, 3 }
  0x39   : > { %v864_v2 = vld [vmem:[%s1322_s9 + $0x78] sm:$0xff]  ;;  %459 = vmatpush.bf16.msra.mxu0 %v856_v1  ;;  %v863_v4 = vld [vmem:[%s1322_s9 + $0x70] sm:$0xff]  ;;  %v862_v6 = vld [vmem:[%s1322_s9 + $0x68] sm:$0xff]  ;;  %s508_s29 = sld [smem:[#allocation3]] (!%p808_p1) }
  0x3a   : > { %472 = vmatpush.bf16.msra.mxu1 %v864_v2  ;;  %v853_v7 = vld [vmem:[%s1322_s9 + $0x20] sm:$0xff]  ;;  %v852_v9 = vld [vmem:[%s1322_s9 + $0x18] sm:$0xff]  ;;  %v851_v11 = vld [vmem:[%s1322_s9 + $0x10] sm:$0xff] }
  0x3b   : > { %v861_v8 = vld [vmem:[%s1322_s9 + $0x60] sm:$0xff]  ;;  %v860_v10 = vld [vmem:[%s1322_s9 + $0x58] sm:$0xff]  ;;  %v859_v12 = vld [vmem:[%s1322_s9 + $0x50] sm:$0xff] }
  0x3c   : > { %v850_v13 = vld [vmem:[%s1322_s9 + $0x8] sm:$0xff]  ;;  %v323_v15 = vld [vmem:[%s1315_s27] sm:$0xff]  ;;  %v849_v18 = vld [vmem:[%s1322_s9] sm:$0xff] }
  0x3d   : > { %460 = vmatpush.bf16.msra.mxu0 %v855_v3  ;;  %v858_v14 = vld [vmem:[%s1322_s9 + $0x48] sm:$0xff]  ;;  %v357_v16 = vunpack.c.l.b16 %v323_v15  ;;  %v358_v17 = vunpack.c.h.b16 %v323_v15  ;;  %v857_v19 = vld [vmem:[%s1322_s9 + $0x40] sm:$0xff] }
  0x3e   : > { %473 = vmatpush.bf16.msra.mxu1 %v863_v4  ;;  %v322_v23 = vld [vmem:[#allocation2] sm:$0xff] }
  0x3f   : > { %v359_v20 = vpack.c.b16 %v357_v16, %v357_v16  ;;  %v360_v21 = vpack.c.b16 %v358_v17, %v358_v17 }
  0x41   : > { %461 = vmatpush.bf16.msra.mxu0 %v854_v5 }
  0x42   : > { %474 = vmatpush.bf16.msra.mxu1 %v862_v6 }
  0x45   : > { %462 = vmatpush.bf16.msra.mxu0 %v853_v7 }
  0x46   : > { %475 = vmatpush.bf16.msra.mxu1 %v861_v8 }
  0x49   : > { %463 = vmatpush.bf16.msra.mxu0 %v852_v9 }
  0x4a   : > { %476 = vmatpush.bf16.msra.mxu1 %v860_v10 }
  0x4d   : > { %464 = vmatpush.bf16.msra.mxu0 %v851_v11 }
  0x4e   : > { %477 = vmatpush.bf16.msra.mxu1 %v859_v12 }
  0x51   : > { %465 = vmatpush.bf16.msra.mxu0 %v850_v13 }
  0x52   : > { %478 = vmatpush.bf16.msra.mxu1 %v858_v14 }
  0x55   : > { %466 = vmatpush.bf16.msra.mxu0 %v849_v18 }
  0x56   : > { %479 = vmatpush.bf16.msra.mxu1 %v857_v19 }
  0x58   : > { %467 = vmatmul.bf16.vlgmr.msra.gmra.mxu0 %v359_v20 }
  0x59   : > { %480 = vmatmul.bf16.vlgmr.msra.gmra.mxu1 %v360_v21 }
  0xd5   : > { %v468_v22 = vpop.f32.mrf.mxu0 }
  0xd6   : > { %v481_v24 = vpop.f32.mrf.mxu1 }
  0xd7   : > { %v482_v25 = vadd.f32 %v481_v24, %v468_v22 }
  0xd9   : > { %v485_v26 = vadd.f32 %v482_v25, %v322_v23 }
  0xda   : > { %490 = sbr.rel (%p808_p1) target bundleno = 503 (0x1f7), region = 56 }
  0xdb   : > { %486 = vst [vmem:[#allocation2] sm:$0xff] %v485_v26 }
  0xdd   : > { %v470_v27 = vpop.f32.mrf.mxu0 }
  0xde   : > { %v483_v28 = vpop.f32.mrf.mxu1 }
  0xdf   : > { %v872_v30 = vld [vmem:[#allocation9 + $0x38] sm:$0xff]  ;;  %v871_v32 = vld [vmem:[#allocation9 + $0x30] sm:$0xff]  ;;  %v870_v33 = vld [vmem:[#allocation9 + $0x28] sm:$0xff]  ;;  %v509_v39 = vstv %s508_s29 }
  0xe0   : > { %578 = vmatpush.bf16.msra.mxu0 %v872_v30  ;;  %v869_v34 = vld [vmem:[#allocation9 + $0x20] sm:$0xff]  ;;  %v868_v35 = vld [vmem:[#allocation9 + $0x18] sm:$0xff]  ;;  %v867_v36 = vld [vmem:[#allocation9 + $0x10] sm:$0xff]  ;;  %v510_v40 = vmul.f32 1.442695, %v509_v39 }
  0xe1   : > { %v866_v37 = vld [vmem:[#allocation9 + $0x8] sm:$0xff]  ;;  %v865_v38 = vld [vmem:[#allocation9] sm:$0xff] }
  0xe2   : > { %v491_v29 = vld [vmem:[#allocation2] sm:$0xff]  ;;  %963 = vpow2.f32 %v510_v40 }
  0xe3   : > { %v492_v31 = vmul.f32 %v491_v29, %v491_v29 }
  0xe4   : > { %579 = vmatpush.bf16.msra.mxu0 %v871_v32 }
  0xe5   : > { %493 = vadd.xlane.f32.xlu0 %v492_v31 }
  0xe8   : > { %580 = vmatpush.bf16.msra.mxu0 %v870_v33  ;;  %v964_v43 = vpop.eup %963 }
  0xe9   : > { %873 = vpush %v964_v43 }
  0xec   : > { %581 = vmatpush.bf16.msra.mxu0 %v869_v34 }
  0xf0   : > { %582 = vmatpush.bf16.msra.mxu0 %v868_v35 }
  0xf4   : > { %583 = vmatpush.bf16.msra.mxu0 %v867_v36 }
  0xf8   : > { %584 = vmatpush.bf16.msra.mxu0 %v866_v37 }
  0xfc   : > { %585 = vmatpush.bf16.msra.mxu0 %v865_v38 }
 0x11a   : > { %s874_s23 = spop %873 }
 0x11b   : > { %v591_v53 = vstv %s874_s23 }
 0x158   : > { %v494_v41 = vpop.xlane.xlu0 %493 }
 0x159   : > { %v495_v42 = vadd.f32 1e-12, %v494_v41 }
 0x15b   : > { %965 = vrsqrt.f32 %v495_v42  ;;  %vm502_vm1 = vweird.f32 %v495_v42 }
 0x161   : > { %v966_v44 = vpop.eup %965 }
 0x162   : > { %v497_v45 = vmul.f32 %v966_v44, %v495_v42  ;;  %vm503_vm0 = vweird.f32 %v966_v44 }
 0x163   : > { %vm504_vm2 = vmor %vm502_vm1, %vm503_vm0 }
 0x164   : > { %v498_v46 = vmul.f32 %v966_v44, %v497_v45 }
 0x166   : > { %v499_v47 = vmul.f32 0.5, %v498_v46 }
 0x168   : > { %v500_v48 = vsub.f32 1.5, %v499_v47 }
 0x16a   : > { %v501_v49 = vmul.f32 %v966_v44, %v500_v48 }
 0x16c   : > { %v505_v50 = vsel %vm504_vm2, %v966_v44, %v501_v49 }
 0x16d   : > { %v506_v51 = vmul.f32 %v505_v50, %v491_v29 }
 0x16f   : > { %507 = vst [vmem:[#allocation11] sm:$0xff] %v506_v51  ;;  %v513_v52 = vpack.c.bf16 %v506_v51, %v506_v51 }
 0x171   : > { %586 = vmatmul.bf16.vlgmr.msra.gmra.mxu0 %v513_v52 }
 0x1ee   : > { %v587_v54 = vpop.f32.mrf.mxu0 }
 0x1ef   : > { %v592_v55 = vmul.f32 %v591_v53, %v587_v54 }
 0x1f1   : > { %593 = vst [vmem:[#allocation10] sm:$0xff] %v592_v55 }
 0x1f6   : > { %v589_v56 = vpop.f32.mrf.mxu0 }
 0x1f7 PF: > { %p905_p3 = scmp.eq.s32.totalorder %s1251_s0, 3  ;;  %s604_s30 = sshll.u32 %s1392_s4, 4  ;;  %s605_s30 = int_to_ptr.hbm [resolvable:$true] %s604_s30 }
 0x1f8   : > { %s1185_s6 = smov [#allocation10]   ;;  %s1186_s10 = smov [#allocation11]  }
 0x1f9   : > { %s602_s12 = sshll.u32 %s1185_s6, 4  ;;  %s616_s15 = sshll.u32 %s1186_s10, 4  ;;  %s603_s12 = int_to_ptr.vmem [resolvable:$true] %s602_s12  ;;  %s617_s15 = int_to_ptr.vmem [resolvable:$true] %s616_s15 }
 0x1fa   : > { %884 = dma.vmem_to_hbm [thread:$0]  (%p905_p3), %s603_s12, 128, %s605_s30, [#allocation6]  }
 0x1fb   : > { %s618_s19 = sshll.u32 %s1393_s5, 4  ;;  %s619_s19 = int_to_ptr.hbm [resolvable:$true] %s618_s19 }
 0x1fc   : > { %886 = dma.vmem_to_hbm [thread:$0]  (%p905_p3), %s617_s15, 128, %s619_s19, [#allocation12]  }
 0x1fd   : > { %1150 = dma.done.wait (%p905_p3), [#allocation6], 128  }
 0x1fe   : > { %1152 = vsyncadd (%p905_p3), [#allocation6], 4294967168 }
 0x1ff   : > { %1154 = dma.done.wait (%p905_p3), [#allocation12], 128  }
 0x200   : > { %1156 = vsyncadd (%p905_p3), [#allocation12], 4294967168 }
 0x201 PF: > { %s25_s25 = sadd.s32 1, %s1179_s25   ;;  %s1405_s26 = sld [smem:[#allocation18_spill]] }
 0x202   : > { %p22_p4 = scmp.ge.s32.totalorder %s25_s25, 6   ;;  %s1406_s20 = smov %s1163_s21 }
 0x203   : > { %s1407_s21 = smov %s1167_s22  ;;  %s1408_s22 = smov %s1295_s16 }
 0x204   : > { %s1409_s23 = smov %s1175_s24  ;;  %24 = sbr.rel (!%p22_p4) target bundleno = 11 (0xb), region = 108 }
 0x207   : > { %s1410_s24 = smov %s1405_s26 }
 0x209   :  { %637 = vsyncpa [#allocation5], 1 }
 0x20a   :  { %639 = vsyncpa [#allocation5 + $0x1], 1 }
 0x20b   :  { %640 = vsyncpa [#allocation8], 1 }
 0x20c   :  { %642 = vsyncpa [#allocation8 + $0x1], 1 }
 0x20d   :  { %643 = vsyncpa [#allocation6], 1 }
 0x20e   :  { %645 = vsyncpa [#allocation6 + $0x1], 1 }
 0x20f   :  { %646 = vsyncpa [#allocation12], 1 }

</bundles_post_ra>
